<compile_context>
chip_gen: v7x
topology: tpu7x:2x2x1
jax: 0.10.0
libtpu: 0.0.40
codegen_flags: <defaults>
</compile_context>

<pallas_src>
import numpy as np
import jax
import jax.numpy as jnp
from jax import lax
from jax.experimental import pallas as pl
from jax.experimental.pallas import tpu as pltpu


def _multiply_attention_kernel(v_ref, q_ref, wv_ref, bv_ref, wq_ref, bq_ref,
                               wl_ref, o_ref):
    TB, K, Dv = v_ref.shape
    H = wv_ref.shape[1]

    # Visual FCNet: fold (TB, K) into the matmul M dimension -> one MXU matmul.
    # (Sublane merge; layout-clean when K % 8 == 0, otherwise Mosaic inserts a
    # small copy — perf only, never numerics.)
    v2 = v_ref[...].reshape(TB * K, Dv)
    vh = jnp.dot(v2, wv_ref[...], preferred_element_type=jnp.float32) + bv_ref[...]
    vh = jnp.maximum(vh, 0.0)                                     # [TB*K, H] f32

    # Query FCNet for the whole batch tile.
    qh = jnp.dot(q_ref[...], wq_ref[...], preferred_element_type=jnp.float32) + bq_ref[...]
    qh = jnp.maximum(qh, 0.0)                                     # [TB, H] f32

    # N=1 output projection folded into the query branch:
    #   logits = sum_h vh * (qh * wl);  its bias cancels in the softmax.
    # TODO(synk): dropout omitted (identity in eval/inference mode).
    w_eff = qh * wl_ref[...]                                      # [TB, H]

    # Stay on the flat [TB*K, H] view: broadcast w_eff across the K objects and
    # do one VPU multiply + one lane reduce (no persistent 3-D joint temporary).
    w_rep = jnp.broadcast_to(w_eff[:, None, :], (TB, K, H)).reshape(TB * K, H)
    logits = jnp.sum((vh * w_rep).reshape(TB, K, H), axis=-1)     # [TB, K] f32

    # Transpose the tiny logits tile to [K, TB] so the softmax reductions are
    # sublane reductions and the output block is lane-dense (TB on lanes).
    # Done as an identity matmul on the idle MXU (q·kᵀ-style dot_general):
    # exact (eye is 0/1) and avoids an XLU relayout transpose.
    eye_k = (lax.broadcasted_iota(jnp.int32, (K, K), 0) ==
             lax.broadcasted_iota(jnp.int32, (K, K), 1)).astype(jnp.float32)
    logits_t = lax.dot_general(eye_k, logits, (((1,), (1,)), ((), ())),
                               preferred_element_type=jnp.float32)  # [K, TB]

    # Softmax over the K objects (sublane axis); EUP approximate reciprocal.
    # Note: for a ragged last block the padding columns may contain garbage /
    # NaN — their stores are masked, valid columns are unaffected.
    m = jnp.max(logits_t, axis=0, keepdims=True)                  # [1, TB]
    e = jnp.exp(logits_t - m)                                     # [K, TB]
    s = jnp.sum(e, axis=0, keepdims=True)                         # [1, TB]
    probs = e * pl.reciprocal(s, approx=True)
    o_ref[...] = probs[None].astype(o_ref.dtype)                  # [1, K, TB]


def _plan_tiles(B, K, Dv, Dq, H, in_itemsize, block_b=None):
    """Pick the batch tile TB and an explicit VMEM limit.

    TB is sized so that:
      * each grid step streams ~1 MiB of v/q (amortizes ~0.35 us per-step cost),
      * double-buffered tiles + f32 intermediates + resident weights fit a
        per-generation VMEM budget (v7x: 64 MiB/TC physical, 32 MiB scoped
        default; v5e/v6e: 128 MiB),
      * the grid keeps >= 2 steps (v7x megacore) whenever a half-batch step
        still streams >= ~512 KiB,
      * TB is a multiple of 8 when blocked (sublane rule for the (TB, Dq) block).
    """
    Hpad = -(-H // 128) * 128                             # lane padding of the hidden dim
    stream_row = (K * Dv + Dq) * in_itemsize              # HBM bytes per batch row
    vmem_row = (2 * stream_row                            # double-buffered v + q tiles
                + 2 * K * 4                               # double-buffered output tile
                + 3 * K * Hpad * 4 + 4 * Hpad * 4)        # f32 intermediates (lane padded)
    resident = (Dv + Dq) * Hpad * in_itemsize + 3 * Hpad * 4   # weights + bias/wl rows

    try:
        vmem_cap = pltpu.get_tpu_info().vmem_capacity_bytes
    except Exception:
        vmem_cap = 64 << 20                               # assume v7x per-core (worst case)
    budget = max(min(vmem_cap // 3, 24 << 20) - resident, 2 << 20)

    if block_b is not None:
        tb = min(int(block_b), B)
    else:
        tb = min(max(1, (1 << 20) // stream_row),          # ~1 MiB streamed per step
                 max(1, budget // vmem_row),               # VMEM budget
                 4096)
        half = -(-B // 2)                                  # >= 2 steps for megacore
        if half * stream_row >= (512 << 10):
            tb = min(tb, half)

    if tb >= B:
        tb = B
    else:
        tb = max(8, (tb // 8) * 8)

    est = resident + tb * vmem_row
    vmem_limit = int(min(64 << 20, max(32 << 20, 2 * est)))
    return tb, vmem_limit


def multiply_attention(v, q, wv_t, bv, wq_t, bq, wl, *, block_b=None):
    """v: [B, K, Dv], q: [B, Dq].
    Weights transposed: wv_t [Dv, H], wq_t [Dq, H]; wl [H] (output-projection row).
    The output-projection bias is intentionally not an argument (cancels in softmax).
    MXU operands follow the *storage* dtype of v / q: to stream v in bf16, pass it
    already stored as bf16 (casting here would cost an extra f32 HBM round trip).
    Returns [B, K, 1] (softmax over K), matching the PyTorch module.
    """
    B, K, Dv = v.shape
    Dq = q.shape[1]
    H = wv_t.shape[1]
    assert wq_t.shape[0] == Dq and wq_t.shape[1] == H
    assert wl.size == H, "module implies hidden_dim == q_dim for the output projection"

    # Weights are tiny and resident: match them to the input storage dtypes.
    wv_t = wv_t.astype(v.dtype)
    wq_t = wq_t.astype(q.dtype)
    bv2 = bv.reshape(1, H).astype(jnp.float32)
    bq2 = bq.reshape(1, H).astype(jnp.float32)
    wl_row = wl.reshape(1, H).astype(jnp.float32)

    in_itemsize = max(jnp.dtype(v.dtype).itemsize, jnp.dtype(q.dtype).itemsize)
    TB, vmem_limit = _plan_tiles(B, K, Dv, Dq, H, in_itemsize, block_b=block_b)
    nb = pl.cdiv(B, TB)

    grid_spec = pltpu.PrefetchScalarGridSpec(
        num_scalar_prefetch=0,
        grid=(nb,),
        in_specs=[
            pl.BlockSpec((TB, K, Dv), lambda b: (b, 0, 0)),   # v  (streamed batch tile)
            pl.BlockSpec((TB, Dq),    lambda b: (b, 0)),      # q  (streamed batch tile)
            pl.BlockSpec((Dv, H),     lambda b: (0, 0)),      # Wv^T (resident)
            pl.BlockSpec((1, H),      lambda b: (0, 0)),      # bv
            pl.BlockSpec((Dq, H),     lambda b: (0, 0)),      # Wq^T (resident)
            pl.BlockSpec((1, H),      lambda b: (0, 0)),      # bq
            pl.BlockSpec((1, H),      lambda b: (0, 0)),      # wl row
        ],
        # Per-block [K, TB] slab: K (full) on sublanes, TB lane-dense on lanes.
        out_specs=pl.BlockSpec((1, K, TB), lambda b: (b, 0, 0)),
    )

    out3 = pl.pallas_call(
        _multiply_attention_kernel,
        out_shape=jax.ShapeDtypeStruct((nb, K, TB), jnp.float32),
        grid_spec=grid_spec,
        compiler_params=pltpu.CompilerParams(
            dimension_semantics=("parallel",),        # megacore sharding on v7x
            vmem_limit_bytes=vmem_limit),
    )(v, q, wv_t, bv2, wq_t, bq2, wl_row)

    # (nb, K, TB) -> (B, K, 1): tiny XLA transpose/reshape, drops ragged padding.
    out = out3.transpose(0, 2, 1).reshape(nb * TB, K)[:B]
    return out.reshape(B, K, 1)


def multiply_attention_ref(v, q, wv_t, bv, wq_t, bq, wl, bl):
    """Pure-JAX reference including the (softmax-cancelling) output bias bl."""
    vh = jnp.maximum(jnp.einsum("bkd,dh->bkh", v.astype(jnp.float32),
                                wv_t.astype(jnp.float32)) + bv, 0.0)
    qh = jnp.maximum(q.astype(jnp.float32) @ wq_t.astype(jnp.float32) + bq, 0.0)
    joint = vh * qh[:, None, :]
    logits = jnp.einsum("bkh,h->bk", joint, wl) + bl
    return jax.nn.softmax(logits, axis=-1)[..., None]


if __name__ == "__main__":
    # Small shapes consistent with the module. NOTE: the PyTorch module applies
    # Linear(q_dim, 1) to a hidden_dim-sized feature, which requires
    # hidden_dim == q_dim; we honor that here.
    B, K = 2, 8
    v_dim, q_dim = 16, 32
    hidden_dim = q_dim  # 32

    key = jax.random.PRNGKey(0)
    kv, kq, kwv, kbv, kwq, kbq, kwl, kbl, kv2, kq2 = jax.random.split(key, 10)

    v = jax.random.normal(kv, (B, K, v_dim), dtype=jnp.float32)
    q = jax.random.normal(kq, (B, q_dim), dtype=jnp.float32)

    # Deterministic synthetic parameters (effective weights after weight_norm).
    wv_t = jax.random.normal(kwv, (v_dim, hidden_dim), dtype=jnp.float32) * 0.1
    bv = jax.random.normal(kbv, (hidden_dim,), dtype=jnp.float32) * 0.1
    wq_t = jax.random.normal(kwq, (q_dim, hidden_dim), dtype=jnp.float32) * 0.1
    bq = jax.random.normal(kbq, (hidden_dim,), dtype=jnp.float32) * 0.1
    wl = jax.random.normal(kwl, (hidden_dim,), dtype=jnp.float32) * 0.1
    bl = jax.random.normal(kbl, (), dtype=jnp.float32) * 0.1   # cancels in softmax

    # 1) Tiny single-block case (TB == B).
    out = jax.block_until_ready(multiply_attention(v, q, wv_t, bv, wq_t, bq, wl))
    ref = multiply_attention_ref(v, q, wv_t, bv, wq_t, bq, wl, bl)
    assert out.shape == (B, K, 1)
    # Tolerance accounts for the EUP approximate reciprocal in the softmax.
    assert np.allclose(np.asarray(out), np.asarray(ref), rtol=1e-2, atol=1e-3)

    # 2) Blocked multi-step path (exercises tiling, megacore-parallel grid and
    #    the lane-dense [K, TB] output layout).
    B2 = 512
    v2 = jax.random.normal(kv2, (B2, K, v_dim), dtype=jnp.float32)
    q2 = jax.random.normal(kq2, (B2, q_dim), dtype=jnp.float32)
    out2 = jax.block_until_ready(
        multiply_attention(v2, q2, wv_t, bv, wq_t, bq, wl, block_b=128))
    ref2 = multiply_attention_ref(v2, q2, wv_t, bv, wq_t, bq, wl, bl)
    assert out2.shape == (B2, K, 1)
    assert np.allclose(np.asarray(out2), np.asarray(ref2), rtol=1e-2, atol=1e-3)

    print("KERNEL_OK")
</pallas_src>

<mosaic_0001>
module attributes {stable_mosaic.version = 11 : i64} {
  func.func @_multiply_attention_kernel(%arg0: i32, %arg1: memref<2x8x16xf32, #tpu.memory_space<vmem>>, %arg2: memref<2x32xf32, #tpu.memory_space<vmem>>, %arg3: memref<16x32xf32, #tpu.memory_space<vmem>>, %arg4: memref<1x32xf32, #tpu.memory_space<vmem>>, %arg5: memref<32x32xf32, #tpu.memory_space<vmem>>, %arg6: memref<1x32xf32, #tpu.memory_space<vmem>>, %arg7: memref<1x32xf32, #tpu.memory_space<vmem>>, %arg8: memref<1x8x2xf32, #tpu.memory_space<vmem>>) attributes {dimension_semantics = [#tpu.dimension_semantics<parallel>], iteration_bounds = array<i64: 1>, scalar_prefetch = 0 : i64, scratch_operands = 0 : i64, tpu.core_type = #tpu.core_type<tc>, window_params = [{transform_indices = @transform_0, window_bounds = array<i64: 2, 8, 16>}, {transform_indices = @transform_1, window_bounds = array<i64: 2, 32>}, {pipeline_mode = #tpu.pipeline_mode<synchronous>, transform_indices = @transform_2, window_bounds = array<i64: 16, 32>}, {pipeline_mode = #tpu.pipeline_mode<synchronous>, transform_indices = @transform_3, window_bounds = array<i64: 1, 32>}, {pipeline_mode = #tpu.pipeline_mode<synchronous>, transform_indices = @transform_4, window_bounds = array<i64: 32, 32>}, {pipeline_mode = #tpu.pipeline_mode<synchronous>, transform_indices = @transform_5, window_bounds = array<i64: 1, 32>}, {pipeline_mode = #tpu.pipeline_mode<synchronous>, transform_indices = @transform_6, window_bounds = array<i64: 1, 32>}, {transform_indices = @transform_7, window_bounds = array<i64: 1, 8, 2>}]} {
    %c0 = arith.constant 0 : index
    %c0_0 = arith.constant 0 : index
    %c0_1 = arith.constant 0 : index
    %0 = vector.load %arg1[%c0, %c0_0, %c0_1] : memref<2x8x16xf32, #tpu.memory_space<vmem>>, vector<2x8x16xf32>
    %1 = vector.shape_cast %0 : vector<2x8x16xf32> to vector<16x16xf32>
    %c0_2 = arith.constant 0 : index
    %c0_3 = arith.constant 0 : index
    %2 = vector.load %arg3[%c0_2, %c0_3] : memref<16x32xf32, #tpu.memory_space<vmem>>, vector<16x32xf32>
    %cst = arith.constant dense<0.000000e+00> : vector<16x32xf32>
    %3 = tpu.matmul %1, %2, %cst {dimension_numbers = #tpu.dot_dimension_numbers<[1], [0], [0], [1], [0, 0, 1, 1], [], []>} : vector<16x16xf32>, vector<16x32xf32>, vector<16x32xf32> -> vector<16x32xf32>
    %c0_4 = arith.constant 0 : index
    %c0_5 = arith.constant 0 : index
    %4 = vector.load %arg4[%c0_4, %c0_5] : memref<1x32xf32, #tpu.memory_space<vmem>>, vector<1x32xf32>
    %5 = vector.broadcast %4 : vector<1x32xf32> to vector<16x32xf32>
    %6 = arith.addf %3, %5 : vector<16x32xf32>
    %cst_6 = arith.constant 0.000000e+00 : f32
    %7 = vector.broadcast %cst_6 : f32 to vector<16x32xf32>
    %8 = arith.maximumf %6, %7 : vector<16x32xf32>
    %c0_7 = arith.constant 0 : index
    %c0_8 = arith.constant 0 : index
    %9 = vector.load %arg2[%c0_7, %c0_8] : memref<2x32xf32, #tpu.memory_space<vmem>>, vector<2x32xf32>
    %c0_9 = arith.constant 0 : index
    %c0_10 = arith.constant 0 : index
    %10 = vector.load %arg5[%c0_9, %c0_10] : memref<32x32xf32, #tpu.memory_space<vmem>>, vector<32x32xf32>
    %cst_11 = arith.constant dense<0.000000e+00> : vector<2x32xf32>
    %11 = tpu.matmul %9, %10, %cst_11 {dimension_numbers = #tpu.dot_dimension_numbers<[1], [0], [0], [1], [0, 0, 1, 1], [], []>} : vector<2x32xf32>, vector<32x32xf32>, vector<2x32xf32> -> vector<2x32xf32>
    %c0_12 = arith.constant 0 : index
    %c0_13 = arith.constant 0 : index
    %12 = vector.load %arg6[%c0_12, %c0_13] : memref<1x32xf32, #tpu.memory_space<vmem>>, vector<1x32xf32>
    %13 = vector.broadcast %12 : vector<1x32xf32> to vector<2x32xf32>
    %14 = arith.addf %11, %13 : vector<2x32xf32>
    %cst_14 = arith.constant 0.000000e+00 : f32
    %15 = vector.broadcast %cst_14 : f32 to vector<2x32xf32>
    %16 = arith.maximumf %14, %15 : vector<2x32xf32>
    %c0_15 = arith.constant 0 : index
    %c0_16 = arith.constant 0 : index
    %17 = vector.load %arg7[%c0_15, %c0_16] : memref<1x32xf32, #tpu.memory_space<vmem>>, vector<1x32xf32>
    %18 = vector.broadcast %17 : vector<1x32xf32> to vector<2x32xf32>
    %19 = arith.mulf %16, %18 : vector<2x32xf32>
    %20 = vector.shape_cast %19 : vector<2x32xf32> to vector<2x1x32xf32>
    %21 = vector.shape_cast %20 : vector<2x1x32xf32> to vector<2x1x32xf32>
    %22 = vector.broadcast %21 : vector<2x1x32xf32> to vector<2x8x32xf32>
    %23 = vector.shape_cast %22 : vector<2x8x32xf32> to vector<16x32xf32>
    %24 = arith.mulf %8, %23 : vector<16x32xf32>
    %25 = vector.shape_cast %24 : vector<16x32xf32> to vector<2x8x32xf32>
    %cst_17 = arith.constant dense<0.000000e+00> : vector<2x8xf32>
    %26 = vector.multi_reduction <add>, %25, %cst_17 [2] : vector<2x8x32xf32> to vector<2x8xf32>
    %27 = tpu.iota {dimensions = array<i32: 0>} : vector<8x8xi32>
    %28 = tpu.iota {dimensions = array<i32: 1>} : vector<8x8xi32>
    %29 = arith.cmpi eq, %27, %28 : vector<8x8xi32>
    %30 = arith.extui %29 : vector<8x8xi1> to vector<8x8xi32>
    %31 = arith.sitofp %30 : vector<8x8xi32> to vector<8x8xf32>
    %cst_18 = arith.constant dense<0.000000e+00> : vector<8x2xf32>
    %32 = tpu.matmul %31, %26, %cst_18 {dimension_numbers = #tpu.dot_dimension_numbers<[1], [1], [0], [0], [0, 0, 1, 0], [], []>} : vector<8x8xf32>, vector<2x8xf32>, vector<8x2xf32> -> vector<8x2xf32>
    %cst_19 = arith.constant dense<0xFF800000> : vector<2xf32>
    %33 = vector.multi_reduction <maximumf>, %32, %cst_19 [0] : vector<8x2xf32> to vector<2xf32>
    %34 = vector.shape_cast %33 : vector<2xf32> to vector<1x2xf32>
    %35 = vector.broadcast %34 : vector<1x2xf32> to vector<8x2xf32>
    %36 = arith.subf %32, %35 : vector<8x2xf32>
    %37 = math.exp %36 : vector<8x2xf32>
    %cst_20 = arith.constant dense<0.000000e+00> : vector<2xf32>
    %38 = vector.multi_reduction <add>, %37, %cst_20 [0] : vector<8x2xf32> to vector<2xf32>
    %39 = vector.shape_cast %38 : vector<2xf32> to vector<1x2xf32>
    %40 = tpu.reciprocal %39 {approx = true} : vector<1x2xf32> -> vector<1x2xf32>
    %41 = vector.broadcast %40 : vector<1x2xf32> to vector<8x2xf32>
    %42 = arith.mulf %37, %41 : vector<8x2xf32>
    %43 = vector.shape_cast %42 : vector<8x2xf32> to vector<1x8x2xf32>
    %c0_21 = arith.constant 0 : index
    %c0_22 = arith.constant 0 : index
    %c0_23 = arith.constant 0 : index
    %44 = vector.load %arg8[%c0_21, %c0_22, %c0_23] : memref<1x8x2xf32, #tpu.memory_space<vmem>>, vector<1x8x2xf32>
    tpu.vector_store %arg8[%c0_21, %c0_22, %c0_23], %43 {strides = array<i32>} : memref<1x8x2xf32, #tpu.memory_space<vmem>>, vector<1x8x2xf32>,
    return
  }
  func.func @transform_0(%arg0: i32) -> (i32, i32, i32) {
    %c0_i32 = arith.constant 0 : i32
    %c0_i32_0 = arith.constant 0 : i32
    %c0_i32_1 = arith.constant 0 : i32
    return %arg0, %c0_i32, %c0_i32_0 : i32, i32, i32
  }
  func.func @transform_1(%arg0: i32) -> (i32, i32) {
    %c0_i32 = arith.constant 0 : i32
    %c0_i32_0 = arith.constant 0 : i32
    return %arg0, %c0_i32 : i32, i32
  }
  func.func @transform_2(%arg0: i32) -> (i32, i32) {
    %c0_i32 = arith.constant 0 : i32
    %c0_i32_0 = arith.constant 0 : i32
    %c0_i32_1 = arith.constant 0 : i32
    return %c0_i32, %c0_i32_0 : i32, i32
  }
  func.func @transform_3(%arg0: i32) -> (i32, i32) {
    %c0_i32 = arith.constant 0 : i32
    %c0_i32_0 = arith.constant 0 : i32
    %c0_i32_1 = arith.constant 0 : i32
    return %c0_i32, %c0_i32_0 : i32, i32
  }
  func.func @transform_4(%arg0: i32) -> (i32, i32) {
    %c0_i32 = arith.constant 0 : i32
    %c0_i32_0 = arith.constant 0 : i32
    %c0_i32_1 = arith.constant 0 : i32
    return %c0_i32, %c0_i32_0 : i32, i32
  }
  func.func @transform_5(%arg0: i32) -> (i32, i32) {
    %c0_i32 = arith.constant 0 : i32
    %c0_i32_0 = arith.constant 0 : i32
    %c0_i32_1 = arith.constant 0 : i32
    return %c0_i32, %c0_i32_0 : i32, i32
  }
  func.func @transform_6(%arg0: i32) -> (i32, i32) {
    %c0_i32 = arith.constant 0 : i32
    %c0_i32_0 = arith.constant 0 : i32
    %c0_i32_1 = arith.constant 0 : i32
    return %c0_i32, %c0_i32_0 : i32, i32
  }
  func.func @transform_7(%arg0: i32) -> (i32, i32, i32) {
    %c0_i32 = arith.constant 0 : i32
    %c0_i32_0 = arith.constant 0 : i32
    %c0_i32_1 = arith.constant 0 : i32
    return %arg0, %c0_i32, %c0_i32_0 : i32, i32, i32
  }
}

</mosaic_0001>

<bundles_post_ra>
// kernel: tpu_custom_call.1
= control target key start
LH: loop header
LB: loop body
LE: loop exit
PB: predicated region body
PF: predicated region fallthrough
CT: control target
= control target key end

     0   :  { %12 = vsyncpa [#allocation3], 0  ;;  %s687_s0 = inlined_call_operand.hbm [shape: f32[2,8,16], index: 0, kind: input, shape index: {}]   ;;  %s688_s1 = inlined_call_operand.vmem [shape: f32[2,32], index: 1, kind: input, shape index: {}]   ;;  %s689_s2 = inlined_call_operand.hbm [shape: f32[16,32], index: 2, kind: input, shape index: {}]   ;;  %s690_s3 = inlined_call_operand.vmem [shape: f32[1,32], index: 3, kind: input, shape index: {}]   ;;  %s691_s4 = inlined_call_operand.hbm [shape: f32[32,32], index: 4, kind: input, shape index: {}]   ;;  %s692_s5 = inlined_call_operand.vmem [shape: f32[1,32], index: 5, kind: input, shape index: {}]   ;;  %s693_s6 = inlined_call_operand.vmem [shape: f32[1,32], index: 6, kind: input, shape index: {}]   ;;  %s694_s7 = inlined_call_operand.vmem [shape: f32[1,8,2], index: 7, kind: output, shape index: {}]  }
   0x1   :  { %13 = vsyncpa [#allocation5], 0  ;;  %s556_s24 = smov [#allocation4]   ;;  %s557_s26 = smov [#allocation2]  }
   0x2   :  { %s33_s25 = sshll.u32 %s556_s24, 4  ;;  %s19_s27 = sshll.u32 %s557_s26, 4  ;;  %s34_s25 = int_to_ptr.vmem [resolvable:$true] %s33_s25  ;;  %s605_s27 = int_to_ptr.vmem [resolvable:$true] %s19_s27 }
   0x3   :  { %s486_s30 = scalar_lea.hbm %s689_s2, 256 }
   0x4   :  { %p487_p0 = scmp.ne.s32.totalorder %s689_s2, %s486_s30  ;;  %p490_p1 = scmp.lt.u32.totalorder %s486_s30, %s689_s2 }
   0x6   :  { %p492_p2 = pnand %p490_p1, %p487_p0 }
   0x8   :  { %495 = shalt.err (!%p492_p2)
}
   0x9   :  { %s496_s12 = scalar_lea.vmem %s34_s25, 256  ;;  %p501_p4 = scmp.lt.s32.totalorder %s34_s25, %s34_s25 }
   0xa   :  { %p497_p3 = scmp.ne.s32.totalorder %s34_s25, %s496_s12  ;;  %p502_p5 = scmp.lt.s32.totalorder %s496_s12, %s496_s12 }
   0xc   :  { %p503_p6 = por %p502_p5, %p501_p4 }
   0xe   :  { %p504_p7 = pnand %p503_p6, %p497_p3 }
  0x10   :  { %507 = shalt.err (!%p504_p7)
}
  0x11   :  { %s558_s13 = smov 128   ;;  %s559_s14 = smov 8  }
  0x12   :  { %39 = dma.hbm_to_vmem [thread:$0]  %s689_s2, 256, %s34_s25, [#allocation5], %s558_s13, %s558_s13, %s559_s14  }
  0x13   :  { %s508_s19 = scalar_lea.hbm %s687_s0, 256 }
  0x14   :  { %p509_p8 = scmp.ne.s32.totalorder %s687_s0, %s508_s19  ;;  %p512_p9 = scmp.lt.u32.totalorder %s508_s19, %s687_s0 }
  0x16   :  { %p514_p10 = pnand %p512_p9, %p509_p8 }
  0x18   :  { %517 = shalt.err (!%p514_p10)
}
  0x19   :  { %s518_s24 = scalar_lea.vmem %s605_s27, 256  ;;  %p523_p12 = scmp.lt.s32.totalorder %s605_s27, %s605_s27 }
  0x1a   :  { %p519_p11 = scmp.ne.s32.totalorder %s605_s27, %s518_s24  ;;  %p524_p13 = scmp.lt.s32.totalorder %s518_s24, %s518_s24 }
  0x1c   :  { %p525_p0 = por %p524_p13, %p523_p12 }
  0x1e   :  { %p526_p1 = pnand %p525_p0, %p519_p11 }
  0x20   :  { %529 = shalt.err (!%p526_p1)
}
  0x21   :  { %25 = dma.hbm_to_vmem [thread:$0]  %s687_s0, 256, %s605_s27, [#allocation3], %s558_s13, %s558_s13, %s559_s14  }
  0x22   :  { %s560_s26 = smov [#allocation6]   ;;  %s530_s8 = scalar_lea.hbm %s691_s4, 512 }
  0x23   :  { %s47_s28 = sshll.u32 %s560_s26, 4  ;;  %p531_p2 = scmp.ne.s32.totalorder %s691_s4, %s530_s8  ;;  %s48_s28 = int_to_ptr.vmem [resolvable:$true] %s47_s28 }
  0x24   :  { %p534_p3 = scmp.lt.u32.totalorder %s530_s8, %s691_s4 }
  0x26   :  { %p536_p4 = pnand %p534_p3, %p531_p2 }
  0x28   :  { %539 = shalt.err (!%p536_p4)
}
  0x29   :  { %s540_s15 = scalar_lea.vmem %s48_s28, 512  ;;  %p545_p6 = scmp.lt.s32.totalorder %s48_s28, %s48_s28 }
  0x2a   :  { %p541_p5 = scmp.ne.s32.totalorder %s48_s28, %s540_s15  ;;  %p546_p7 = scmp.lt.s32.totalorder %s540_s15, %s540_s15 }
  0x2c   :  { %p547_p8 = por %p546_p7, %p545_p6 }
  0x2e   :  { %p548_p9 = pnand %p547_p8, %p541_p5 }
  0x30   :  { %551 = shalt.err (!%p548_p9)
}
  0x31   :  { %53 = dma.hbm_to_vmem [thread:$0]  %s691_s4, 512, %s48_s28, [#allocation5], %s558_s13, %s558_s13, %s559_s14  }
  0x32   :  { %552 = dma.done.wait [#allocation3], 256  }
  0x33   :  { %553 = vsyncadd [#allocation3], 4294967040 }
  0x34   :  { %554 = dma.done.wait [#allocation5], 768  }
  0x35   :  { %555 = vsyncadd [#allocation5], 4294966528  ;;  %v561_v0 = vmov 0.0|0.0   ;;  %vm562_vm0 = vmmov 0   ;;  %v563_v1 = vmov 0.0   ;;  %v163_v2 = vld [vmem:[#allocation6] sm:$0xff]  ;;  %v261_v14 = vlaneseq }
  0x36   :  { %467 = vmatprep.subr.bf16.mxu1 %v561_v0  ;;  %455 = vmatprep.mubr.msk.f32.mxu1 %vm562_vm0, %v563_v1  ;;  %v164_v3 = vld [vmem:[#allocation6 + $0x8] sm:$0xff]  ;;  %v165_v4 = vld [vmem:[#allocation6 + $0x10] sm:$0xff]  ;;  %vm78_vm1 = vcmask 130048   ;;  %v166_v6 = vld [vmem:[#allocation6 + $0x18] sm:$0xff]  ;;  %vm174_vm2 = vcmask 261120   ;;  %vm315_vm4 = vcmask 1041409  }
  0x37   :  { %v468_v5 = vpack.c.bf16 %v164_v3, %v163_v2  ;;  %v69_v7 = vld [vmem:[#allocation4] sm:$0xff]  ;;  %v70_v8 = vld [vmem:[#allocation4 + $0x8] sm:$0xff]  ;;  %v67_v9 = vld [vmem:[#allocation2] sm:$0xff]  ;;  %v471_v10 = vpack.c.bf16 %v166_v6, %v165_v4  ;;  %v262_v15 = vshrl.u32 %v261_v14, 7  ;;  %v301_v16 = vand.u32 127, %v261_v14 }
  0x38   :  { %v463_v11 = vpack.c.bf16 %v70_v8, %v69_v7  ;;  %444 = vmatprep.mubr.msk.f32.mxu0 %vm78_vm1, %v67_v9  ;;  %v68_v12 = vld [vmem:[#allocation2 + $0x8] sm:$0xff]  ;;  %v162_v13 = vld [vmem:[%s688_s1] sm:$0x3]  ;;  %v564_v18 = vmov 1966171168   ;;  %vm317_vm5 = vcmask 64512  }
  0x39   :  { %469 = vmatpush3.bf16.msra.mxu1 %v468_v5  ;;  %vm302_vm3 = vcmp.eq.s32.totalorder %v262_v15, %v301_v16  ;;  %v309_v17 = vsub.s32 %v301_v16, %v262_v15  ;;  %v259_v19 = vunpack.c.l.s4 %v564_v18  ;;  %v423_v20 = vld [vmem:[%s692_s5] ss:$0 sm:$0xff]  ;;  %v282_v34 = vsub.s32 0, %v262_v15 }
  0x3a   :  { %470 = vmatprep.subr.bf16.mxu1 %v561_v0  ;;  %464 = vmatprep.subr.bf16.mxu0 %v463_v11  ;;  %v425_v27 = vld [vmem:[%s693_s6] ss:$0 sm:$0xff]  ;;  %v426_v52 = vsel %vm302_vm3, 1.0, %v563_v1  ;;  %vm393_vm6 = vcmask 15360  }
  0x3b   :  { %466 = vmatpush3.bf16.msra.mxu0 %v463_v11  ;;  %v260_v21 = vunpack.c.0.s8 %v259_v19  ;;  %v420_v28 = vld [vmem:[%s690_s3] ss:$0 sm:$0xff] }
  0x3c   :  { %458 = vmatprep.subr.mxu0 %v563_v1 }
  0x3d   :  { %472 = vmatpush3.bf16.msra.mxu1 %v471_v10  ;;  %v263_v30 = vsub.s32 %v260_v21, %v262_v15 }
  0x3e   :  { %445 = vmatmul.mubr.msk.f32.vlgmr.msra.gmra.mrb[0].mxu0 %vm78_vm1, %v68_v12 }
  0x3f   :  { %460 = vmatprep.mubr.msk.f32.mxu0 %vm562_vm0, %v563_v1 }
  0x40   :  { %456 = vmatmul.mubr.msk.f32.vlgmr.msra.gmra.mrb[0].mxu1 %vm174_vm2, %v162_v13 }
 0x111   :  { %v446_v22 = vpop.f32.mrb[0].mxu0 }
 0x112   :  { %v151_v24 = vpop.f32.mrb[1].mxu0  ;;  %v157_v36 = vadd.f32 %v446_v22, %v420_v28 }
 0x113   :  { %v244_v23 = vpop.f32.mrb[0].mxu1  ;;  %v152_v32 = vadd.f32 %v420_v28, %v151_v24 }
 0x114   :  { %v245_v25 = vadd.f32 %v423_v20, %v244_v23  ;;  %v457_v26 = vpop.f32.mrb[1].mxu1  ;;  %v161_v41 = vmax.f32 %v157_v36, 0.0 }
 0x115   :  { %v160_v37 = vmax.f32 %v152_v32, 0.0 }
 0x116   :  { %v248_v29 = vmax.f32 %v245_v25, 0.0 }
 0x118   :  { %v256_v31 = vmul.f32 %v425_v27, %v248_v29 }
 0x11a   :  { %v264_v33 = vrot.slane %v256_v31, %v263_v30 }
 0x11c   :  { %v265_v35 = vcombine.high %v264_v33, %v264_v33  ;;  %v272_v38 = vrot.slane %v264_v33, %v263_v30 }
 0x11e   :  { %v283_v39 = vrot.slane %v272_v38, %v282_v34  ;;  %v279_v40 = vrot.slane %v265_v35, %v263_v30 }
 0x120   :  { %v290_v42 = vmul.f32 %v283_v39, %v160_v37  ;;  %v287_v43 = vrot.slane %v279_v40, %v282_v34 }
 0x122   :  { %v292_v44 = vsel %vm174_vm2, %v290_v42, 0.0  ;;  %v291_v45 = vmul.f32 %v287_v43, %v161_v41 }
 0x123   :  { %293 = vadd.xlane.f32.xlu0 %v292_v44 }
 0x124   :  { %v295_v46 = vsel %vm174_vm2, %v291_v45, 0.0 }
 0x127   :  { %296 = vadd.xlane.f32.xlu0 %v295_v46 }
 0x1b0   :  { %v294_v47 = vpop.xlane.xlu0 %293 }
 0x1b1   :  { %v310_v49 = vrot.slane %v294_v47, %v309_v17 }
 0x1b4   :  { %v297_v48 = vpop.xlane.xlu0 %296 }
 0x1b5   :  { %v314_v50 = vrot.slane %v297_v48, %v309_v17 }
 0x1b7   :  { %v316_v51 = vsel %vm315_vm4, %v314_v50, %v310_v49 }
 0x1b8   :  { %459 = vmatpush3.xpose.msk.msra.mxu0 %vm317_vm5, %v316_v51 }
 0x1bb   :  { %461 = vmatmul.mubr.msk.f32.vlgmr.msra.gmra.mrb[2].mxu0 %vm317_vm5, %v426_v52 }
 0x28e   :  { %v389_v53 = vpop.f32.mrb[2].mxu0 }
 0x28f   :  { %v394_v54 = vsel %vm393_vm6, %v389_v53, -inf  ;;  %v462_v55 = vpop.f32.mrb[3].mxu0 }
 0x290   :  { %v395_v56 = vrot.slane %v394_v54, 4 }
 0x292   :  { %v396_v57 = vmax.f32 %v394_v54, %v395_v56 }
 0x294   :  { %v397_v58 = vrot.slane %v396_v57, 2 }
 0x296   :  { %v398_v59 = vmax.f32 %v396_v57, %v397_v58 }
 0x298   :  { %v399_v60 = vrot.slane %v398_v59, 1 }
 0x29a   :  { %v400_v61 = vmax.f32 %v398_v59, %v399_v60 }
 0x29c   :  { %v401_v62 = vsub.f32 %v389_v53, %v400_v61 }
 0x29e   :  { %v402_v63 = vmul.f32 1.442695, %v401_v62 }
 0x2a0   :  { %482 = vpow2.f32 %v402_v63 }
 0x2aa   :  { %v483_v0 = vpop.eup %482 }
 0x2ab   :  { %v404_v2 = vsel %vm393_vm6, %v483_v0, 0.0 }
 0x2ac   :  { %v405_v3 = vrot.slane %v404_v2, 4 }
 0x2ae   :  { %v406_v1 = vadd.f32 %v405_v3, %v404_v2 }
 0x2b0   :  { %v407_v4 = vrot.slane %v406_v1, 2 }
 0x2b2   :  { %v408_v5 = vadd.f32 %v407_v4, %v406_v1 }
 0x2b4   :  { %v409_v6 = vrot.slane %v408_v5, 1 }
 0x2b6   :  { %v410_v7 = vadd.f32 %v409_v6, %v408_v5 }
 0x2b8   :  { %484 = vrcp.f32 %v410_v7 }
 0x2c2   :  { %v485_v8 = vpop.eup %484 }
 0x2c3   :  { %v412_v9 = vmul.f32 %v485_v8, %v483_v0 }
 0x2c5   :  { %413 = vst.msk [vmem:[%s694_s7] sm:$0xff] %vm393_vm6, %v412_v9 }
 0x2c6   :  { %418 = vsyncpa [#allocation3], 1 }
 0x2c7   :  { %419 = vsyncpa [#allocation5], 1 }

</bundles_post_ra>
